<compile_context>
chip_gen: v5e
topology: v5e:2x2
jax: 0.10.0
libtpu: 0.0.40
codegen_flags: <defaults>
</compile_context>

<pallas_src>
import functools

import jax
import jax.numpy as jnp
from jax.experimental import pallas as pl
from jax.experimental.pallas import tpu as pltpu

# ----- problem sizes (small, TPU-friendly) -----
B = 2     # batch
C = 4     # ECG leads / channels
L = 128   # signal length (lane axis inside the kernel)
K = 3     # conv kernel size (padding = 1, stride = 1)
H = 32    # conv output channels (hidden)
D = 32    # feature / embedding dim


# ---------------------------------------------------------------------------
# Pallas kernel: whole-batch ECG encoder forward, single invocation, no grid
# ---------------------------------------------------------------------------
def ecg_encoder_kernel(x_ref, wtaps_ref, wprojT_ref, bprojT_ref, pool_ref,
                       out_ref):
    # x_ref      : (B, C, L)    channels-first ECG
    # wtaps_ref  : (K, H, C)    per-tap conv weights, wtaps[k][h, c] = wconv[k, c, h]
    # wprojT_ref : (D, H)       projection weights, pre-transposed host-side
    # bprojT_ref : (D, 1)       projection bias (column)
    # pool_ref   : (B*L, B)     block-diagonal 1/L mean-pool matrix
    # out_ref    : (D, B)       features, MXU-native orientation (one slab store)

    # Lane-batch the whole batch: (C, B*L) so one conv push fills 256 lanes.
    x0 = jnp.concatenate([x_ref[b] for b in range(B)], axis=1)        # (C, B*L)

    # 'same'-padding taps: single XLU rotate + VPU edge mask (no zero-column
    # stitching).  Edge lanes of each 128-wide batch segment are zeroed so the
    # rotate never leaks data across batch boundaries.
    lane = jax.lax.broadcasted_iota(jnp.int32, (C, B * L), 1)
    is_first = functools.reduce(
        jnp.logical_or, [lane == b * L for b in range(B)])
    is_last = functools.reduce(
        jnp.logical_or, [lane == b * L + (L - 1) for b in range(B)])
    x_m1 = jnp.where(is_first, 0.0, pltpu.roll(x0, shift=1, axis=1))        # x[:, l-1]
    x_p1 = jnp.where(is_last, 0.0, pltpu.roll(x0, shift=B * L - 1, axis=1))  # x[:, l+1]

    # Conv as three (H,C)@(C,B*L) MXU pushes summed (no sublane im2col stitch),
    # then ReLU.  Result stays lane-dense: (H, B*L).
    acc = jnp.dot(wtaps_ref[0], x_m1, preferred_element_type=jnp.float32)
    acc = acc + jnp.dot(wtaps_ref[1], x0, preferred_element_type=jnp.float32)
    acc = acc + jnp.dot(wtaps_ref[2], x_p1, preferred_element_type=jnp.float32)
    acc = jnp.maximum(acc, 0.0)                                        # (H, B*L)

    # Per-batch global mean pool as one MXU matmul against the block-diagonal
    # 1/L matrix (MXU instead of cross-lane XLU reductions).
    pooled = jnp.dot(acc, pool_ref[...],
                     preferred_element_type=jnp.float32)               # (H, B)

    # Batched projection on the MXU: (D,H)@(H,B) + bias, one slab store.
    out = jnp.dot(wprojT_ref[...], pooled,
                  preferred_element_type=jnp.float32)                  # (D, B)
    out_ref[...] = out + bprojT_ref[...]


@jax.jit
def ecg_encoder_forward(ecg_ncl, wtaps, wprojT, bprojT):
    """ecg_ncl: (B, C, L) float32 -> features (B, D) float32."""
    # Block-diagonal mean-pool matrix (pure constant; folded at compile time).
    rows = jnp.arange(B * L, dtype=jnp.int32)[:, None]
    cols = jnp.arange(B, dtype=jnp.int32)[None, :]
    pool_w = jnp.where(rows // L == cols, 1.0 / L, 0.0).astype(jnp.float32)

    flops = 2 * K * H * C * (B * L) + 2 * H * (B * L) * B + 2 * D * H * B
    bytes_accessed = 4 * (B * C * L + K * H * C + D * H + D + B * L * B + D * B)

    vmem = pl.BlockSpec(memory_space=pltpu.MemorySpace.VMEM)
    out_db = pl.pallas_call(
        ecg_encoder_kernel,
        out_shape=jax.ShapeDtypeStruct((D, B), jnp.float32),
        in_specs=[vmem, vmem, vmem, vmem, vmem],
        out_specs=vmem,
        cost_estimate=pl.CostEstimate(flops=flops, transcendentals=0,
                                      bytes_accessed=bytes_accessed),
    )(ecg_ncl, wtaps, wprojT, bprojT, pool_w)
    # 256-byte relayout to the module-facing (B, D); fused into this jit.
    return out_db.T


# ---------------------------------------------------------------------------
# Deterministic toy tokenizer (string processing — stays on host)
# ---------------------------------------------------------------------------
def toy_tokenizer(texts, max_len=8, vocab_size=128, pad_id=0):
    # TODO(synk): real LLM tokenization (BPE on strings) has no Pallas equivalent;
    # this is a deterministic host-side stand-in producing padded int32 ids + mask.
    def tok(t):
        ids = [(sum(ord(ch) for ch in w) % (vocab_size - 1)) + 1
               for w in t.split()][:max_len]
        mask = [1] * len(ids) + [0] * (max_len - len(ids))
        ids = ids + [pad_id] * (max_len - len(ids))
        return ids, mask
    pairs = [tok(t) for t in texts]
    input_ids = jnp.array([p[0] for p in pairs], jnp.int32)
    attention_mask = jnp.array([p[1] for p in pairs], jnp.int32)
    return {"input_ids": input_ids, "attention_mask": attention_mask}


# ---------------------------------------------------------------------------
# Joint model wrapper (mirrors ECGTextJointModel.forward)
# ---------------------------------------------------------------------------
class ECGTextJointModel:
    def __init__(self, wconv, wproj, bproj):
        # Host-side, one-time weight relayouts:
        #   per-tap slabs  wtaps[k, h, c] = wconv[k, c, h]     -> (K, H, C)
        #   projection     wprojT = wproj.T                    -> (D, H)
        #   bias column    bprojT = bproj.T                    -> (D, 1)
        self.wtaps = jnp.transpose(wconv, (0, 2, 1))
        self.wprojT = jnp.transpose(wproj)
        self.bprojT = jnp.transpose(bproj)
        # llm_model is held but never used in the reference forward pass.

    def __call__(self, ecg_data, text_input):
        ecg_embedding = ecg_encoder_forward(ecg_data, self.wtaps,
                                            self.wprojT, self.bprojT)
        text_tokens = toy_tokenizer(text_input)
        return ecg_embedding, text_tokens


# ---------------------------------------------------------------------------
def _reference_encoder(ecg_ncl, wconv, wproj, bproj):
    """Pure-JAX reference for correctness checking."""
    x = jnp.transpose(ecg_ncl, (0, 2, 1))                      # (B, L, C)
    xp = jnp.pad(x, ((0, 0), (1, 1), (0, 0)))                  # (B, L+2, C)
    acc = jnp.zeros((B, L, H), jnp.float32)
    for k in range(K):
        acc = acc + jnp.einsum("blc,ch->blh", xp[:, k:k + L, :], wconv[k])
    acc = jnp.maximum(acc, 0.0)
    pooled = jnp.mean(acc, axis=1)                              # (B, H)
    return pooled @ wproj + bproj[0]


if __name__ == "__main__":
    key = jax.random.PRNGKey(0)
    k1, k2, k3, k4 = jax.random.split(key, 4)

    ecg_data = jax.random.normal(k1, (B, C, L), jnp.float32)
    wconv = jax.random.normal(k2, (K, C, H), jnp.float32) * 0.1
    wproj = jax.random.normal(k3, (H, D), jnp.float32) * 0.1
    bproj = jax.random.normal(k4, (1, D), jnp.float32) * 0.01

    model = ECGTextJointModel(wconv, wproj, bproj)
    text_input = ["patient shows sinus rhythm", "possible atrial fibrillation"]

    ecg_embedding, text_tokens = model(ecg_data, text_input)
    jax.block_until_ready(ecg_embedding)
    jax.block_until_ready(text_tokens["input_ids"])

    ref = _reference_encoder(ecg_data, wconv, wproj, bproj)
    assert ecg_embedding.shape == (B, D)
    assert text_tokens["input_ids"].shape[0] == len(text_input)
    assert jnp.allclose(ecg_embedding, ref, atol=1e-4, rtol=1e-4)

    print("KERNEL_OK")
</pallas_src>

<mosaic_0001>
module attributes {stable_mosaic.version = 11 : i64} {
  func.func @ecg_encoder_kernel(%arg0: memref<2x4x128xf32, #tpu.memory_space<vmem>>, %arg1: memref<3x32x4xf32, #tpu.memory_space<vmem>>, %arg2: memref<32x32xf32, #tpu.memory_space<vmem>>, %arg3: memref<32x1xf32, #tpu.memory_space<vmem>>, %arg4: memref<256x2xf32, #tpu.memory_space<vmem>>, %arg5: memref<32x2xf32, #tpu.memory_space<vmem>>) attributes {dimension_semantics = [], scalar_prefetch = 0 : i64, scratch_operands = 0 : i64, tpu.core_type = #tpu.core_type<tc>} {
    %c0 = arith.constant 0 : index
    %c0_0 = arith.constant 0 : index
    %c0_1 = arith.constant 0 : index
    %0 = vector.load %arg0[%c0, %c0_0, %c0_1] : memref<2x4x128xf32, #tpu.memory_space<vmem>>, vector<1x4x128xf32>
    %1 = vector.shape_cast %0 : vector<1x4x128xf32> to vector<4x128xf32>
    %c1 = arith.constant 1 : index
    %c0_2 = arith.constant 0 : index
    %c0_3 = arith.constant 0 : index
    %2 = vector.load %arg0[%c1, %c0_2, %c0_3] : memref<2x4x128xf32, #tpu.memory_space<vmem>>, vector<1x4x128xf32>
    %3 = vector.shape_cast %2 : vector<1x4x128xf32> to vector<4x128xf32>
    %4 = tpu.concatenate %1, %3 in 1 : vector<4x128xf32>, vector<4x128xf32> -> vector<4x256xf32>
    %5 = tpu.iota {dimensions = array<i32: 1>} : vector<4x256xi32>
    %c0_i32 = arith.constant 0 : i32
    %6 = vector.broadcast %c0_i32 : i32 to vector<4x256xi32>
    %7 = arith.cmpi eq, %5, %6 : vector<4x256xi32>
    %c128_i32 = arith.constant 128 : i32
    %8 = vector.broadcast %c128_i32 : i32 to vector<4x256xi32>
    %9 = arith.cmpi eq, %5, %8 : vector<4x256xi32>
    %10 = arith.ori %7, %9 : vector<4x256xi1>
    %c127_i32 = arith.constant 127 : i32
    %11 = vector.broadcast %c127_i32 : i32 to vector<4x256xi32>
    %12 = arith.cmpi eq, %5, %11 : vector<4x256xi32>
    %c255_i32 = arith.constant 255 : i32
    %13 = vector.broadcast %c255_i32 : i32 to vector<4x256xi32>
    %14 = arith.cmpi eq, %5, %13 : vector<4x256xi32>
    %15 = arith.ori %12, %14 : vector<4x256xi1>
    %c1_i32 = arith.constant 1 : i32
    %16 = tpu.dynamic_rotate %4 by %c1_i32 dim 1 : vector<4x256xf32>, i32 -> vector<4x256xf32>
    %cst = arith.constant 0.000000e+00 : f32
    %17 = vector.broadcast %cst : f32 to vector<4x256xf32>
    %18 = arith.select %10, %17, %16 : vector<4x256xi1>, vector<4x256xf32>
    %c255_i32_4 = arith.constant 255 : i32
    %19 = tpu.dynamic_rotate %4 by %c255_i32_4 dim 1 : vector<4x256xf32>, i32 -> vector<4x256xf32>
    %cst_5 = arith.constant 0.000000e+00 : f32
    %20 = vector.broadcast %cst_5 : f32 to vector<4x256xf32>
    %21 = arith.select %15, %20, %19 : vector<4x256xi1>, vector<4x256xf32>
    %c0_6 = arith.constant 0 : index
    %c0_7 = arith.constant 0 : index
    %c0_8 = arith.constant 0 : index
    %22 = vector.load %arg1[%c0_6, %c0_7, %c0_8] : memref<3x32x4xf32, #tpu.memory_space<vmem>>, vector<1x32x4xf32>
    %23 = vector.shape_cast %22 : vector<1x32x4xf32> to vector<32x4xf32>
    %cst_9 = arith.constant dense<0.000000e+00> : vector<32x256xf32>
    %24 = tpu.matmul %23, %18, %cst_9 {dimension_numbers = #tpu.dot_dimension_numbers<[1], [0], [0], [1], [0, 0, 1, 1], [], []>} : vector<32x4xf32>, vector<4x256xf32>, vector<32x256xf32> -> vector<32x256xf32>
    %c1_10 = arith.constant 1 : index
    %c0_11 = arith.constant 0 : index
    %c0_12 = arith.constant 0 : index
    %25 = vector.load %arg1[%c1_10, %c0_11, %c0_12] : memref<3x32x4xf32, #tpu.memory_space<vmem>>, vector<1x32x4xf32>
    %26 = vector.shape_cast %25 : vector<1x32x4xf32> to vector<32x4xf32>
    %cst_13 = arith.constant dense<0.000000e+00> : vector<32x256xf32>
    %27 = tpu.matmul %26, %4, %cst_13 {dimension_numbers = #tpu.dot_dimension_numbers<[1], [0], [0], [1], [0, 0, 1, 1], [], []>} : vector<32x4xf32>, vector<4x256xf32>, vector<32x256xf32> -> vector<32x256xf32>
    %28 = arith.addf %24, %27 : vector<32x256xf32>
    %c2 = arith.constant 2 : index
    %c0_14 = arith.constant 0 : index
    %c0_15 = arith.constant 0 : index
    %29 = vector.load %arg1[%c2, %c0_14, %c0_15] : memref<3x32x4xf32, #tpu.memory_space<vmem>>, vector<1x32x4xf32>
    %30 = vector.shape_cast %29 : vector<1x32x4xf32> to vector<32x4xf32>
    %cst_16 = arith.constant dense<0.000000e+00> : vector<32x256xf32>
    %31 = tpu.matmul %30, %21, %cst_16 {dimension_numbers = #tpu.dot_dimension_numbers<[1], [0], [0], [1], [0, 0, 1, 1], [], []>} : vector<32x4xf32>, vector<4x256xf32>, vector<32x256xf32> -> vector<32x256xf32>
    %32 = arith.addf %28, %31 : vector<32x256xf32>
    %cst_17 = arith.constant 0.000000e+00 : f32
    %33 = vector.broadcast %cst_17 : f32 to vector<32x256xf32>
    %34 = arith.maximumf %32, %33 : vector<32x256xf32>
    %c0_18 = arith.constant 0 : index
    %c0_19 = arith.constant 0 : index
    %35 = vector.load %arg4[%c0_18, %c0_19] : memref<256x2xf32, #tpu.memory_space<vmem>>, vector<256x2xf32>
    %cst_20 = arith.constant dense<0.000000e+00> : vector<32x2xf32>
    %36 = tpu.matmul %34, %35, %cst_20 {dimension_numbers = #tpu.dot_dimension_numbers<[1], [0], [0], [1], [0, 0, 1, 1], [], []>} : vector<32x256xf32>, vector<256x2xf32>, vector<32x2xf32> -> vector<32x2xf32>
    %c0_21 = arith.constant 0 : index
    %c0_22 = arith.constant 0 : index
    %37 = vector.load %arg2[%c0_21, %c0_22] : memref<32x32xf32, #tpu.memory_space<vmem>>, vector<32x32xf32>
    %cst_23 = arith.constant dense<0.000000e+00> : vector<32x2xf32>
    %38 = tpu.matmul %37, %36, %cst_23 {dimension_numbers = #tpu.dot_dimension_numbers<[1], [0], [0], [1], [0, 0, 1, 1], [], []>} : vector<32x32xf32>, vector<32x2xf32>, vector<32x2xf32> -> vector<32x2xf32>
    %c0_24 = arith.constant 0 : index
    %c0_25 = arith.constant 0 : index
    %39 = vector.load %arg3[%c0_24, %c0_25] : memref<32x1xf32, #tpu.memory_space<vmem>>, vector<32x1xf32>
    %40 = vector.broadcast %39 : vector<32x1xf32> to vector<32x2xf32>
    %41 = arith.addf %38, %40 : vector<32x2xf32>
    %c0_26 = arith.constant 0 : index
    %c0_27 = arith.constant 0 : index
    %42 = vector.load %arg5[%c0_26, %c0_27] : memref<32x2xf32, #tpu.memory_space<vmem>>, vector<32x2xf32>
    tpu.vector_store %arg5[%c0_26, %c0_27], %41 {strides = array<i32>} : memref<32x2xf32, #tpu.memory_space<vmem>>, vector<32x2xf32>,
    return
  }
}

</mosaic_0001>

<bundles_post_ra>
// kernel: ecg_encoder_forward.1
= control target key start
LH: loop header
LB: loop body
LE: loop exit
PB: predicated region body
PF: predicated region fallthrough
CT: control target
= control target key end

     0   :  { %vm78_vm0 = vcmask 1043456   ;;  %vm65_vm1 = vcmask 31744   ;;  %s537_s22 = smov 127   ;;  %s538_s23 = smov 1   ;;  %v23_v6 = vlaneseq  ;;  %vm434_vm8 = vcmask 261120   ;;  %s777_s0 = inlined_call_operand.vmem [shape: f32[2,4,128], index: 0, kind: input, shape index: {}]   ;;  %s778_s1 = inlined_call_operand.vmem [shape: f32[3,32,4], index: 1, kind: input, shape index: {}]   ;;  %s779_s4 = inlined_call_operand.vmem [shape: f32[256,2], index: 4, kind: input, shape index: {}]   ;;  %s780_s3 = inlined_call_operand.vmem [shape: f32[32,1], index: 3, kind: input, shape index: {}]   ;;  %s781_s2 = inlined_call_operand.vmem [shape: f32[32,32], index: 2, kind: input, shape index: {}]   ;;  %s782_s5 = inlined_call_operand.vmem [shape: f32[32,2], index: 5, kind: output, shape index: {}]  }
   0x1   :  { %v20_v0 = vld [vmem:[%s777_s0] sm:$0xf]  ;;  %v487_v1 = vld [vmem:[%s778_s1 + $0x28] sm:$0xff]  ;;  %v485_v2 = vld [vmem:[%s777_s0 + $0x4] sm:$0xf]  ;;  %vm476_vm9 = vcmask 15360  }
   0x2   :  { %47 = vrot.lane.b32.xlu1 %v20_v0, %s537_s22  ;;  %38 = vrot.lane.b32.xlu0 %v20_v0, %s538_s23  ;;  %v486_v3 = vld [vmem:[%s778_s1 + $0x20] sm:$0xff]  ;;  %v488_v4 = vld [vmem:[%s778_s1 + $0x30] sm:$0xff]  ;;  %v24_v7 = vand.u32 127, %v23_v6 }
   0x3   :  { %528 = vmatpush.msk.msra.mxu1 %vm78_vm0, %v20_v0  ;;  %529 = vmatpush.msk.msra.mxu2 %vm78_vm0, %v20_v0  ;;  %v489_v5 = vld [vmem:[%s778_s1 + $0x38] sm:$0xff]  ;;  %v56_v21 = vld [vmem:[%s778_s1] sm:$0xff]  ;;  %v330_v25 = vld [vmem:[%s779_s4 + $0x70] sm:$0xff] }
   0x4   :  { %492 = vmatmul.msk.f32.vlgmr.msra.gmra.mxu1 %vm65_vm1, %v487_v1  ;;  %530 = vmatpush.msk.msra.mxu3 %vm78_vm0, %v20_v0  ;;  %v25_v10 = vadd.s32 128, %v24_v7  ;;  %vm51_vm2 = vcmp.lt.s32.totalorder %v24_v7, 127  ;;  %vm42_vm3 = vcmp.lt.s32.totalorder %v24_v7, 1  ;;  %vm26_vm5 = vcmp.eq.s32.totalorder %v24_v7, 0  ;;  %v510_v22 = vld [vmem:[%s778_s1 + $0x40] sm:$0xff]  ;;  %v331_v23 = vld [vmem:[%s779_s4 + $0x78] sm:$0xff] }
   0x5   :  { %495 = vmatpush.msk.msrb.mxu1 %vm78_vm0, %v485_v2  ;;  %490 = vmatpush.msk.msra.mxu0 %vm78_vm0, %v20_v0  ;;  %vm32_vm7 = vcmp.eq.s32.totalorder %v24_v7, 127  ;;  %v347_v24 = vld [vmem:[%s779_s4 + $0xf8] sm:$0xff]  ;;  %v346_v26 = vld [vmem:[%s779_s4 + $0xf0] sm:$0xff]  ;;  %v329_v27 = vld [vmem:[%s779_s4 + $0x68] sm:$0xff] }
   0x6   :  { %491 = vmatmul.msk.f32.vlgmr.msra.gmra.mxu0 %vm65_vm1, %v486_v3  ;;  %493 = vmatmul.msk.f32.vlgmr.msra.gmra.mxu2 %vm65_vm1, %v488_v4  ;;  %vm35_vm4 = vcmp.eq.s32.totalorder %v25_v10, 255  ;;  %vm29_vm6 = vcmp.eq.s32.totalorder %v25_v10, 128  ;;  %v345_v28 = vld [vmem:[%s779_s4 + $0xe8] sm:$0xff]  ;;  %v328_v31 = vld [vmem:[%s779_s4 + $0x60] sm:$0xff]  ;;  %v327_v33 = vld [vmem:[%s779_s4 + $0x58] sm:$0xff] }
   0x7   :  { %494 = vmatmul.msk.f32.vlgmr.msra.gmra.mxu3 %vm65_vm1, %v489_v5  ;;  %v57_v29 = vld [vmem:[%s778_s1 + $0x8] sm:$0xff]  ;;  %v344_v32 = vld [vmem:[%s779_s4 + $0xe0] sm:$0xff]  ;;  %v343_v34 = vld [vmem:[%s779_s4 + $0xd8] sm:$0xff] }
   0x8   :  { %v511_v30 = vld [vmem:[%s778_s1 + $0x48] sm:$0xff]  ;;  %v58_v35 = vld [vmem:[%s778_s1 + $0x10] sm:$0xff]  ;;  %v59_v37 = vld [vmem:[%s778_s1 + $0x18] sm:$0xff] }
   0x9   :  { %v512_v36 = vld [vmem:[%s778_s1 + $0x50] sm:$0xff]  ;;  %v513_v38 = vld [vmem:[%s778_s1 + $0x58] sm:$0xff]  ;;  %v325_v41 = vld [vmem:[%s779_s4 + $0x48] sm:$0xff] }
   0xa   :  { %49 = vrot.lane.b32.xlu1 %v485_v2, %s537_s22  ;;  %40 = vrot.lane.b32.xlu0 %v485_v2, %s538_s23  ;;  %v326_v39 = vld [vmem:[%s779_s4 + $0x50] sm:$0xff]  ;;  %v341_v42 = vld [vmem:[%s779_s4 + $0xc8] sm:$0xff] }
   0xb   :  { %v342_v40 = vld [vmem:[%s779_s4 + $0xd0] sm:$0xff]  ;;  %v324_v43 = vld [vmem:[%s779_s4 + $0x40] sm:$0xff]  ;;  %v323_v45 = vld [vmem:[%s779_s4 + $0x38] sm:$0xff] }
   0xc   :  { %496 = vmatmul.msk.f32.vlgmr.msrb.gmra.mxu1 %vm65_vm1, %v486_v3  ;;  %v340_v44 = vld [vmem:[%s779_s4 + $0xc0] sm:$0xff]  ;;  %v339_v46 = vld [vmem:[%s779_s4 + $0xb8] sm:$0xff]  ;;  %v322_v47 = vld [vmem:[%s779_s4 + $0x30] sm:$0xff] }
   0xd   :  { %v338_v48 = vld [vmem:[%s779_s4 + $0xb0] sm:$0xff]  ;;  %v321_v49 = vld [vmem:[%s779_s4 + $0x28] sm:$0xff]  ;;  %v320_v51 = vld [vmem:[%s779_s4 + $0x20] sm:$0xff] }
   0xe   :  { %v337_v50 = vld [vmem:[%s779_s4 + $0xa8] sm:$0xff]  ;;  %v336_v52 = vld [vmem:[%s779_s4 + $0xa0] sm:$0xff]  ;;  %v319_v56 = vld [vmem:[%s779_s4 + $0x18] sm:$0xff] }
   0xf   :  { %v335_v57 = vld [vmem:[%s779_s4 + $0x98] sm:$0xff]  ;;  %v318_v58 = vld [vmem:[%s779_s4 + $0x10] sm:$0xff]  ;;  %v317_v60 = vld [vmem:[%s779_s4 + $0x8] sm:$0xff] }
  0x10   :  { %v334_v59 = vld [vmem:[%s779_s4 + $0x90] sm:$0xff]  ;;  %v333_v61 = vld [vmem:[%s779_s4 + $0x88] sm:$0xff]  ;;  %v316_v62 = vld [vmem:[%s779_s4] sm:$0xff] }
  0x11   :  { %v332_v63 = vld [vmem:[%s779_s4 + $0x80] sm:$0xff] }
  0x14   :  { %497 = vmatmul.msk.f32.gmra.mxu1 %vm65_vm1, %v487_v1 }
  0x1c   :  { %498 = vmatmul.msk.f32.gmra.mxu1 %vm65_vm1, %v488_v4 }
  0x24   :  { %499 = vmatmul.msk.f32.gmra.mxu1 %vm65_vm1, %v489_v5 }
  0x74   :  { %v48_v8 = vpop.permute.xlu1 %47  ;;  %v39_v9 = vpop.permute.xlu0 %38 }
  0x7c   :  { %v50_v11 = vpop.permute.xlu1 %49  ;;  %v41_v12 = vpop.permute.xlu0 %40 }
  0x7d   :  { %v52_v13 = vsel %vm51_vm2, %v48_v8, %v50_v11  ;;  %v53_v14 = vsel %vm51_vm2, %v50_v11, %v48_v8  ;;  %v43_v15 = vsel %vm42_vm3, %v39_v9, %v41_v12  ;;  %v44_v16 = vsel %vm42_vm3, %v41_v12, %v39_v9 }
  0x7e   :  { %v55_v17 = vsel %vm35_vm4, 0.0, %v53_v14  ;;  %v45_v18 = vsel %vm26_vm5, 0.0, %v44_v16  ;;  %v46_v19 = vsel %vm29_vm6, 0.0, %v43_v15  ;;  %v54_v20 = vsel %vm32_vm7, 0.0, %v52_v13 }
  0x7f   :  { %500 = vmatpush.msk.msrb.mxu2 %vm78_vm0, %v45_v18  ;;  %505 = vmatpush.msk.msrb.mxu3 %vm78_vm0, %v46_v19 }
  0x80   :  { %514 = vmatpush.msk.msrb.mxu0 %vm78_vm0, %v54_v20  ;;  %519 = vmatpush.msk.msra.mxu1 %vm78_vm0, %v55_v17 }
  0x81   :  { %501 = vmatmul.msk.f32.vlgmr.msrb.gmra.mxu2 %vm65_vm1, %v56_v21  ;;  %506 = vmatmul.msk.f32.vlgmr.msrb.gmra.mxu3 %vm65_vm1, %v56_v21  ;;  %v105_v53 = vpop.f32.mrf.mxu1 }
  0x82   :  { %515 = vmatmul.msk.f32.vlgmr.msrb.gmra.mxu0 %vm65_vm1, %v510_v22  ;;  %520 = vmatmul.msk.f32.vlgmr.msra.gmra.mxu1 %vm65_vm1, %v510_v22 }
  0x83   :  { %348 = vmatpush.msra.mxu2 %v331_v23  ;;  %377 = vmatpush.msra.mxu3 %v347_v24  ;;  %v102_v1 = vpop.f32.mrf.mxu0 }
  0x85   :  { %349 = vmatpush.msra.mxu2 %v330_v25  ;;  %378 = vmatpush.msra.mxu3 %v346_v26 }
  0x87   :  { %350 = vmatpush.msra.mxu2 %v329_v27  ;;  %379 = vmatpush.msra.mxu3 %v345_v28 }
  0x89   :  { %502 = vmatmul.msk.f32.gmra.mxu2 %vm65_vm1, %v57_v29  ;;  %507 = vmatmul.msk.f32.gmra.mxu3 %vm65_vm1, %v57_v29  ;;  %v131_v54 = vpop.f32.mrf.mxu1  ;;  %v108_v3 = vpop.f32.mrf.mxu2 }
  0x8a   :  { %516 = vmatmul.msk.f32.gmra.mxu0 %vm65_vm1, %v511_v30  ;;  %521 = vmatmul.msk.f32.gmra.mxu1 %vm65_vm1, %v511_v30  ;;  %v111_v4 = vpop.f32.mrf.mxu3 }
  0x8b   :  { %351 = vmatpush.msra.mxu2 %v328_v31  ;;  %380 = vmatpush.msra.mxu3 %v344_v32 }
  0x8d   :  { %352 = vmatpush.msra.mxu2 %v327_v33  ;;  %381 = vmatpush.msra.mxu3 %v343_v34 }
  0x8f   :  { %353 = vmatpush.msra.mxu2 %v326_v39  ;;  %382 = vmatpush.msra.mxu3 %v342_v40 }
  0x91   :  { %503 = vmatmul.msk.f32.gmra.mxu2 %vm65_vm1, %v58_v35  ;;  %508 = vmatmul.msk.f32.gmra.mxu3 %vm65_vm1, %v58_v35  ;;  %v134_v55 = vpop.f32.mrf.mxu1 }
  0x92   :  { %517 = vmatmul.msk.f32.gmra.mxu0 %vm65_vm1, %v512_v36  ;;  %522 = vmatmul.msk.f32.gmra.mxu1 %vm65_vm1, %v512_v36 }
  0x93   :  { %354 = vmatpush.msra.mxu2 %v325_v41  ;;  %383 = vmatpush.msra.mxu3 %v341_v42 }
  0x95   :  { %355 = vmatpush.msra.mxu2 %v324_v43  ;;  %384 = vmatpush.msra.mxu3 %v340_v44 }
  0x97   :  { %356 = vmatpush.msra.mxu2 %v323_v45  ;;  %385 = vmatpush.msra.mxu3 %v339_v46 }
  0x99   :  { %504 = vmatmul.msk.f32.gmra.mxu2 %vm65_vm1, %v59_v37  ;;  %509 = vmatmul.msk.f32.gmra.mxu3 %vm65_vm1, %v59_v37  ;;  %v137_v0 = vpop.f32.mrf.mxu1 }
  0x9a   :  { %518 = vmatmul.msk.f32.gmra.mxu0 %vm65_vm1, %v513_v38  ;;  %523 = vmatmul.msk.f32.gmra.mxu1 %vm65_vm1, %v513_v38 }
  0x9b   :  { %357 = vmatpush.msra.mxu2 %v322_v47  ;;  %386 = vmatpush.msra.mxu3 %v338_v48 }
  0x9d   :  { %358 = vmatpush.msra.mxu2 %v321_v49  ;;  %387 = vmatpush.msra.mxu3 %v337_v50 }
  0x9f   :  { %359 = vmatpush.msra.mxu2 %v320_v51  ;;  %388 = vmatpush.msra.mxu3 %v336_v52 }
  0xa1   :  { %360 = vmatpush.msra.mxu2 %v319_v56  ;;  %389 = vmatpush.msra.mxu3 %v335_v57  ;;  %v140_v2 = vpop.f32.mrf.mxu1  ;;  %v539_v56 = vmov 0   ;;  %v410_v57 = vld [vmem:[%s780_s3] sm:$0xff] }
  0xa2   :  { %535 = vset.pattern.permute.xlu0 %v539_v56  ;;  %536 = vset.pattern.permute.xlu1 %v539_v56 }
  0xa3   :  { %361 = vmatpush.msra.mxu2 %v318_v58  ;;  %390 = vmatpush.msra.mxu3 %v334_v59  ;;  %v413_v58 = vld [vmem:[%s780_s3 + $0x18] sm:$0xff] }
  0xa4   :  { %534 = vset.pattern.permute.xlu2 %v539_v56  ;;  %431 = vperm.xlu1 %536, %v413_v58  }
  0xa5   :  { %362 = vmatpush.msra.mxu2 %v317_v60  ;;  %391 = vmatpush.msra.mxu3 %v333_v61  ;;  %v406_v61 = vld [vmem:[%s781_s2] sm:$0xff] }
  0xa6   :  { %416 = vperm.xlu2 %534, %v410_v57  }
  0xa7   :  { %363 = vmatpush.msra.mxu2 %v316_v62  ;;  %392 = vmatpush.msra.mxu3 %v332_v63  ;;  %v411_v62 = vld [vmem:[%s780_s3 + $0x8] sm:$0xff] }
  0xa8   :  { %v407_v63 = vld [vmem:[%s781_s2 + $0x8] sm:$0xff] }
  0xae   :  { %421 = vperm.xlu2 %534, %v411_v62  }
  0xff   :  { %v259_v5 = vpop.f32.mrf.mxu0  ;;  %v288_v6 = vpop.f32.mrf.mxu1 }
 0x104   :  { %v178_v7 = vpop.f32.mrf.mxu2  ;;  %v207_v8 = vpop.f32.mrf.mxu3 }
 0x105   :  { %v179_v9 = vadd.f32 %v178_v7, %v102_v1  ;;  %v208_v10 = vadd.f32 %v207_v8, %v131_v54  ;;  %v412_v54 = vld [vmem:[%s780_s3 + $0x10] sm:$0xff]  ;;  %v409_v1 = vld [vmem:[%s781_s2 + $0x18] sm:$0xff] }
 0x106   :  { %426 = vperm.xlu0 %535, %v412_v54  }
 0x107   :  { %v300_v11 = vadd.f32 %v259_v5, %v179_v9  ;;  %v301_v12 = vadd.f32 %v288_v6, %v208_v10  ;;  %v262_v13 = vpop.f32.mrf.mxu0  ;;  %v291_v14 = vpop.f32.mrf.mxu1 }
 0x109   :  { %v308_v15 = vmax.f32 %v300_v11, 0.0  ;;  %v309_v16 = vmax.f32 %v301_v12, 0.0 }
 0x10b   :  { %364 = vmatmul.f32.vlgmr.msra.gmra.mxu2 %v308_v15  ;;  %393 = vmatmul.f32.vlgmr.msra.gmra.mxu3 %v309_v16 }
 0x10c   :  { %v181_v17 = vpop.f32.mrf.mxu2  ;;  %v210_v18 = vpop.f32.mrf.mxu3 }
 0x10d   :  { %v182_v19 = vadd.f32 %v181_v17, %v105_v53  ;;  %v211_v20 = vadd.f32 %v210_v18, %v134_v55 }
 0x10f   :  { %v302_v21 = vadd.f32 %v262_v13, %v182_v19  ;;  %v303_v22 = vadd.f32 %v291_v14, %v211_v20  ;;  %v265_v25 = vpop.f32.mrf.mxu0  ;;  %v294_v26 = vpop.f32.mrf.mxu1 }
 0x111   :  { %v310_v23 = vmax.f32 %v302_v21, 0.0  ;;  %v311_v24 = vmax.f32 %v303_v22, 0.0 }
 0x113   :  { %367 = vmatmul.f32.gmra.mxu2 %v310_v23  ;;  %396 = vmatmul.f32.gmra.mxu3 %v311_v24 }
 0x114   :  { %v184_v27 = vpop.f32.mrf.mxu2  ;;  %v213_v28 = vpop.f32.mrf.mxu3 }
 0x115   :  { %v185_v29 = vadd.f32 %v184_v27, %v108_v3  ;;  %v214_v30 = vadd.f32 %v213_v28, %v137_v0  ;;  %v408_v0 = vld [vmem:[%s781_s2 + $0x10] sm:$0xff] }
 0x116   :  { %v432_v11 = vpop.permute.xlu1 %431 }
 0x117   :  { %v304_v31 = vadd.f32 %v265_v25, %v185_v29  ;;  %v305_v32 = vadd.f32 %v294_v26, %v214_v30  ;;  %v268_v35 = vpop.f32.mrf.mxu0  ;;  %v297_v36 = vpop.f32.mrf.mxu1 }
 0x119   :  { %v312_v33 = vmax.f32 %v304_v31, 0.0  ;;  %v313_v34 = vmax.f32 %v305_v32, 0.0 }
 0x11b   :  { %370 = vmatmul.f32.gmra.mxu2 %v312_v33  ;;  %399 = vmatmul.f32.gmra.mxu3 %v313_v34 }
 0x11c   :  { %v187_v37 = vpop.f32.mrf.mxu2  ;;  %v216_v38 = vpop.f32.mrf.mxu3 }
 0x11d   :  { %v188_v39 = vadd.f32 %v187_v37, %v111_v4  ;;  %v217_v40 = vadd.f32 %v216_v38, %v140_v2  ;;  %v417_v2 = vpop.permute.xlu2 %416 }
 0x11f   :  { %v306_v41 = vadd.f32 %v268_v35, %v188_v39  ;;  %v307_v42 = vadd.f32 %v297_v36, %v217_v40 }
 0x121   :  { %v314_v43 = vmax.f32 %v306_v41, 0.0  ;;  %v315_v44 = vmax.f32 %v307_v42, 0.0 }
 0x123   :  { %373 = vmatmul.f32.gmra.mxu2 %v314_v43  ;;  %402 = vmatmul.f32.gmra.mxu3 %v315_v44 }
 0x125   :  { %v422_v5 = vpop.permute.xlu2 %421 }
 0x178   :  { %v427_v8 = vpop.permute.xlu0 %426 }
 0x18e   :  { %v365_v45 = vpop.f32.mrf.mxu2  ;;  %v394_v46 = vpop.f32.mrf.mxu3 }
 0x18f   :  { %v395_v60 = vadd.f32 %v394_v46, %v365_v45 }
 0x196   :  { %v368_v47 = vpop.f32.mrf.mxu2  ;;  %v397_v48 = vpop.f32.mrf.mxu3 }
 0x197   :  { %v398_v59 = vadd.f32 %v397_v48, %v368_v47 }
 0x19e   :  { %v371_v49 = vpop.f32.mrf.mxu2  ;;  %v400_v50 = vpop.f32.mrf.mxu3 }
 0x19f   :  { %v401_v55 = vadd.f32 %v400_v50, %v371_v49 }
 0x1a6   :  { %v374_v51 = vpop.f32.mrf.mxu2  ;;  %v403_v52 = vpop.f32.mrf.mxu3 }
 0x1a7   :  { %v404_v53 = vadd.f32 %v403_v52, %v374_v51 }
 0x1a9   :  { %459 = vmatpush.msra.mxu0 %v404_v53 }
 0x1ab   :  { %460 = vmatpush.msra.mxu0 %v401_v55 }
 0x1ad   :  { %461 = vmatpush.msra.mxu0 %v398_v59 }
 0x1af   :  { %462 = vmatpush.msra.mxu0 %v395_v60 }
 0x1b0   :  { %524 = vmatmul.msk.f32.vlgmr.msra.gmra.mxu0 %vm434_vm8, %v406_v61 }
 0x1b8   :  { %525 = vmatmul.msk.f32.gmra.mxu0 %vm434_vm8, %v407_v63 }
 0x1c0   :  { %526 = vmatmul.msk.f32.gmra.mxu0 %vm434_vm8, %v408_v0 }
 0x1c8   :  { %527 = vmatmul.msk.f32.gmra.mxu0 %vm434_vm8, %v409_v1 }
 0x22d   :  { %v464_v3 = vpop.f32.mrf.mxu0 }
 0x22e   :  { %v465_v4 = vadd.f32 %v464_v3, %v417_v2 }
 0x230   :  { %477 = vst.msk [vmem:[%s782_s5] sm:$0xff] %vm476_vm9, %v465_v4 }
 0x235   :  { %v467_v6 = vpop.f32.mrf.mxu0 }
 0x236   :  { %v468_v7 = vadd.f32 %v467_v6, %v422_v5 }
 0x238   :  { %478 = vst.msk [vmem:[%s782_s5 + $0x8] sm:$0xff] %vm476_vm9, %v468_v7 }
 0x23d   :  { %v470_v9 = vpop.f32.mrf.mxu0 }
 0x23e   :  { %v471_v10 = vadd.f32 %v470_v9, %v427_v8 }
 0x240   :  { %479 = vst.msk [vmem:[%s782_s5 + $0x10] sm:$0xff] %vm476_vm9, %v471_v10 }
 0x245   :  { %v473_v12 = vpop.f32.mrf.mxu0 }
 0x246   :  { %v474_v13 = vadd.f32 %v473_v12, %v432_v11 }
 0x248   :  { %480 = vst.msk [vmem:[%s782_s5 + $0x18] sm:$0xff] %vm476_vm9, %v474_v13 }

</bundles_post_ra>
